<compile_context>
chip_gen: v7x
topology: tpu7x:2x2x1
jax: 0.10.0
libtpu: 0.0.40
codegen_flags: <defaults>
</compile_context>

<pallas_src>
import functools

import jax
import jax.numpy as jnp
from jax.experimental import pallas as pl
from jax.experimental.pallas import tpu as pltpu

LANES = 128
SUBLANE_PACK = 32            # LCM of sublane packing: f32=8, bf16=16, int8/fp8=32
MEGACORE_MIN_BYTES = 1 << 20  # above this, force >=2 (even #) grid blocks for v7x


def _hardshrink_kernel(x_ref, o_ref, *, lambd):
    x = x_ref[...]
    # Cast lambd to the input dtype: avoids an accidental f32 upcast of
    # bf16/f16 tiles.  (For non-representable lambd this shifts the threshold
    # by <= 1 ulp vs. a full-precision compare; documented, negligible.)
    lam = jnp.asarray(lambd, dtype=x.dtype)
    zero = jnp.zeros((), dtype=x.dtype)
    # Same result as the torch where-chain (incl. NaN -> 0, |x| <= lambd -> 0).
    o_ref[...] = jnp.where(jnp.abs(x) > lam, x, zero)


def _hardshrink_xla(x, lambd):
    """Plain fused-XLA select; used for tiny inputs and the <128-elem tail."""
    lam = jnp.asarray(lambd, dtype=x.dtype)
    return jnp.where(jnp.abs(x) > lam, x, jnp.zeros((), dtype=x.dtype))


def _pick_tile_bytes() -> int:
    # v7x: ~3.2 TB/s per-TC HBM -> per-step overhead is a bigger fraction of
    # step time, so use ~8 MiB tiles.  v5e/v6e: 4 MiB already sits at ~86% of
    # the HBM roofline; bigger tiles only add VMEM pressure and fill/drain.
    try:
        kind = jax.devices()[0].device_kind.lower()
    except Exception:  # pragma: no cover - defensive; default is fine.
        kind = ""
    return (8 if "7" in kind else 4) * 1024 * 1024


def hardshrink(x: jax.Array, lambd: float = 0.5, *,
               target_tile_bytes: int | None = None,
               min_pallas_bytes: int = 256 * 1024) -> jax.Array:
    orig_shape = x.shape
    dtype = x.dtype
    itemsize = jnp.dtype(dtype).itemsize
    n = x.size
    if n == 0:
        return x

    # Tiny activations: custom-call launch + pipeline fill dominate and block
    # XLA fusion; a fused select is strictly faster there.
    if n * itemsize < min_pallas_bytes:
        return _hardshrink_xla(x, lambd)

    if target_tile_bytes is None:
        target_tile_bytes = _pick_tile_bytes()

    x_flat = jnp.ravel(x)

    # Lane-dense prefix: rows * 128 elements go through Pallas (free reshape
    # for 128-aligned sizes).  The <128-element tail is handled in the
    # wrapper, avoiding the old whole-array pad + slice copies.
    rows = n // LANES
    n_main = rows * LANES
    if rows == 0:
        return _hardshrink_xla(x, lambd)
    x2d = x_flat[:n_main].reshape(rows, LANES)

    # Tile rows from the per-chip target tile size, rounded to sublane packing.
    tile_rows = max(SUBLANE_PACK, target_tile_bytes // (LANES * itemsize))
    tile_rows = (tile_rows // SUBLANE_PACK) * SUBLANE_PACK

    main_bytes = n_main * itemsize
    if main_bytes >= MEGACORE_MIN_BYTES:
        # v7x megacore: at least 2 grid blocks, rounded up to an even count so
        # the two TensorCores get balanced work.  No effect on v5e/v6e.
        num_blocks = max(2, pl.cdiv(rows, tile_rows))
        if num_blocks % 2:
            num_blocks += 1
        block_rows = pl.cdiv(rows, num_blocks)
        block_rows = pl.cdiv(block_rows, SUBLANE_PACK) * SUBLANE_PACK
    else:
        # Small enough for a single block covering the full row extent
        # (allowed even if rows is not a multiple of 8/32).
        block_rows = rows if rows <= tile_rows else tile_rows

    grid = (pl.cdiv(rows, block_rows),)
    tile_bytes = block_rows * LANES * itemsize
    # 2 buffers x (in + out) x tile, plus slack for compiler-internal scratch.
    vmem_limit = int(4 * tile_bytes + 8 * 1024 * 1024)

    kernel = functools.partial(_hardshrink_kernel, lambd=lambd)
    main_out = pl.pallas_call(
        kernel,
        out_shape=jax.ShapeDtypeStruct((rows, LANES), dtype),
        grid=grid,
        in_specs=[pl.BlockSpec((block_rows, LANES), lambda i: (i, 0))],
        out_specs=pl.BlockSpec((block_rows, LANES), lambda i: (i, 0)),
        compiler_params=pltpu.CompilerParams(
            dimension_semantics=("parallel",),
            vmem_limit_bytes=vmem_limit,
        ),
        cost_estimate=pl.CostEstimate(
            flops=2 * n_main,
            transcendentals=0,
            bytes_accessed=2 * n_main * itemsize,
        ),
    )(x2d)

    out_flat = main_out.reshape(-1)
    if n_main != n:
        # <128-element tail: tiny fused select, stitched back on.
        tail_out = _hardshrink_xla(x_flat[n_main:], lambd)
        out_flat = jnp.concatenate([out_flat, tail_out])
    return out_flat.reshape(orig_shape)


def _reference(x, lambd):
    # Plain JAX, literally the torch.where chain from the module.
    return jnp.where(x < -lambd, x, jnp.where(x > lambd, x, jnp.zeros_like(x)))


if __name__ == "__main__":
    lambd = 0.5
    key = jax.random.PRNGKey(0)
    k1, k2, k3 = jax.random.split(key, 3)

    # Small NCHW activation consistent with the module's typical use.  Force
    # the Pallas path (min_pallas_bytes=0) so the kernel itself is exercised.
    x = jax.random.normal(k1, (2, 4, 16, 16), dtype=jnp.float32) * 2.0
    out = jax.block_until_ready(hardshrink(x, lambd, min_pallas_bytes=0))
    assert out.shape == x.shape and out.dtype == x.dtype
    assert jnp.array_equal(out, _reference(x, lambd)), "mismatch vs reference (f32)"

    # Size not divisible by 128: exercises the aligned-prefix + tail path.
    y = jax.random.normal(k2, (3, 5, 9), dtype=jnp.float32) * 2.0  # 135 elems
    out_y = jax.block_until_ready(hardshrink(y, lambd, min_pallas_bytes=0))
    assert out_y.shape == y.shape and out_y.dtype == y.dtype
    assert jnp.array_equal(out_y, _reference(y, lambd)), "mismatch vs reference (tail)"

    # ~1 MiB input: exercises the multi-block, megacore-balanced grid.
    z = jax.random.normal(k3, (512, 512), dtype=jnp.float32) * 2.0
    out_z = jax.block_until_ready(hardshrink(z, lambd))
    assert out_z.shape == z.shape and out_z.dtype == z.dtype
    assert jnp.array_equal(out_z, _reference(z, lambd)), "mismatch vs reference (1MiB)"

    print("KERNEL_OK")
</pallas_src>

<mosaic_0001>
module attributes {stable_mosaic.version = 11 : i64} {
  func.func @_hardshrink_kernel(%arg0: i32, %arg1: memref<16x128xf32, #tpu.memory_space<vmem>>, %arg2: memref<16x128xf32, #tpu.memory_space<vmem>>) attributes {dimension_semantics = [#tpu.dimension_semantics<parallel>], iteration_bounds = array<i64: 1>, scalar_prefetch = 0 : i64, scratch_operands = 0 : i64, tpu.core_type = #tpu.core_type<tc>, window_params = [{transform_indices = @transform_0, window_bounds = array<i64: 16, 128>}, {transform_indices = @transform_1, window_bounds = array<i64: 16, 128>}]} {
    %c0 = arith.constant 0 : index
    %c0_0 = arith.constant 0 : index
    %0 = vector.load %arg1[%c0, %c0_0] : memref<16x128xf32, #tpu.memory_space<vmem>>, vector<16x128xf32>
    %1 = math.absf %0 : vector<16x128xf32>
    %cst = arith.constant 5.000000e-01 : f32
    %2 = vector.broadcast %cst : f32 to vector<16x128xf32>
    %3 = arith.cmpf ogt, %1, %2 : vector<16x128xf32>
    %cst_1 = arith.constant 0.000000e+00 : f32
    %4 = vector.broadcast %cst_1 : f32 to vector<16x128xf32>
    %5 = arith.select %3, %0, %4 : vector<16x128xi1>, vector<16x128xf32>
    %c0_2 = arith.constant 0 : index
    %c0_3 = arith.constant 0 : index
    %6 = vector.load %arg2[%c0_2, %c0_3] : memref<16x128xf32, #tpu.memory_space<vmem>>, vector<16x128xf32>
    tpu.vector_store %arg2[%c0_2, %c0_3], %5 {strides = array<i32>} : memref<16x128xf32, #tpu.memory_space<vmem>>, vector<16x128xf32>,
    return
  }
  func.func @transform_0(%arg0: i32) -> (i32, i32) {
    %c0_i32 = arith.constant 0 : i32
    %c0_i32_0 = arith.constant 0 : i32
    return %arg0, %c0_i32 : i32, i32
  }
  func.func @transform_1(%arg0: i32) -> (i32, i32) {
    %c0_i32 = arith.constant 0 : i32
    %c0_i32_0 = arith.constant 0 : i32
    return %arg0, %c0_i32 : i32, i32
  }
}

</mosaic_0001>

<bundles_post_ra>
// kernel: tpu_custom_call.1
= control target key start
LH: loop header
LB: loop body
LE: loop exit
PB: predicated region body
PF: predicated region fallthrough
CT: control target
= control target key end

     0   :  { %6 = vsyncpa [#allocation3], 0  ;;  %s146_s0 = inlined_call_operand.hbm [shape: f32[16,128], index: 0, kind: input, shape index: {}]   ;;  %s147_s1 = inlined_call_operand.hbm [shape: f32[16,128], index: 1, kind: output, shape index: {}]  }
   0x1   :  { %7 = vsyncpa [#allocation4], 0  ;;  %s102_s6 = smov [#allocation2]   ;;  %s54_s10 = scalar_lea.hbm %s146_s0, 256 }
   0x2   :  { %s13_s7 = sshll.u32 %s102_s6, 4  ;;  %p55_p0 = scmp.ne.s32.totalorder %s146_s0, %s54_s10  ;;  %s14_s7 = int_to_ptr.vmem [resolvable:$true] %s13_s7 }
   0x3   :  { %p58_p1 = scmp.lt.u32.totalorder %s54_s10, %s146_s0 }
   0x5   :  { %p60_p2 = pnand %p58_p1, %p55_p0 }
   0x7   :  { %63 = shalt.err (!%p60_p2)
}
   0x8   :  { %s64_s15 = scalar_lea.vmem %s14_s7, 256  ;;  %p69_p4 = scmp.lt.s32.totalorder %s14_s7, %s14_s7 }
   0x9   :  { %p65_p3 = scmp.ne.s32.totalorder %s14_s7, %s64_s15  ;;  %p70_p5 = scmp.lt.s32.totalorder %s64_s15, %s64_s15 }
   0xb   :  { %p71_p6 = por %p70_p5, %p69_p4 }
   0xd   :  { %p72_p7 = pnand %p71_p6, %p65_p3 }
   0xf   :  { %75 = shalt.err (!%p72_p7)
}
  0x10   :  { %s103_s16 = smov 128   ;;  %s104_s17 = smov 8  }
  0x11   :  { %19 = dma.hbm_to_vmem [thread:$0]  %s146_s0, 256, %s14_s7, [#allocation3], %s103_s16, %s103_s16, %s104_s17  }
  0x12   :  { %98 = dma.done.wait [#allocation3], 256  }
  0x13   :  { %99 = vsyncadd [#allocation3], 4294967040  ;;  %v23_v0 = vld [vmem:[#allocation2] sm:$0xff]  ;;  %v24_v1 = vld [vmem:[#allocation2 + $0x8] sm:$0xff]  ;;  %s105_s20 = smov [#allocation5]  }
  0x14   :  { %s38_s21 = sshll.u32 %s105_s20, 4  ;;  %v25_v2 = vand.u32 2147483647, %v23_v0  ;;  %v26_v3 = vand.u32 2147483647, %v24_v1  ;;  %s39_s21 = int_to_ptr.vmem [resolvable:$true] %s38_s21 }
  0x15   :  { %s76_s22 = scalar_lea.vmem %s39_s21, 256  ;;  %p81_p9 = scmp.lt.s32.totalorder %s39_s21, %s39_s21 }
  0x16   :  { %vm27_vm0 = vcmp.gt.f32.partialorder %v25_v2, 0.5  ;;  %vm28_vm1 = vcmp.gt.f32.partialorder %v26_v3, 0.5  ;;  %p77_p8 = scmp.ne.s32.totalorder %s39_s21, %s76_s22  ;;  %p82_p10 = scmp.lt.s32.totalorder %s76_s22, %s76_s22 }
  0x17   :  { %v29_v4 = vsel %vm27_vm0, %v23_v0, 0.0  ;;  %v30_v5 = vsel %vm28_vm1, %v24_v1, 0.0 }
  0x18   :  { %31 = vst [vmem:[#allocation5] sm:$0xff] %v29_v4  ;;  %32 = vst [vmem:[#allocation5 + $0x8] sm:$0xff] %v30_v5  ;;  %p83_p11 = por %p82_p10, %p81_p9 }
  0x1a   :  { %p84_p12 = pnand %p83_p11, %p77_p8 }
  0x1c   :  { %87 = shalt.err (!%p84_p12)
}
  0x1d   :  { %s88_s24 = scalar_lea.hbm %s147_s1, 256 }
  0x1e   :  { %p89_p13 = scmp.ne.s32.totalorder %s147_s1, %s88_s24  ;;  %p92_p0 = scmp.lt.u32.totalorder %s88_s24, %s147_s1 }
  0x20   :  { %p94_p1 = pnand %p92_p0, %p89_p13 }
  0x22   :  { %97 = shalt.err (!%p94_p1)
}
  0x23   :  { %44 = dma.vmem_to_hbm [thread:$0]  %s39_s21, 256, %s147_s1, [#allocation4], %s103_s16, %s103_s16, %s104_s17  }
  0x24   :  { %100 = dma.done.wait [#allocation4], 256  }
  0x25   :  { %101 = vsyncadd [#allocation4], 4294967040 }
  0x26   :  { %48 = vsyncpa [#allocation3], 1 }
  0x27   :  { %49 = vsyncpa [#allocation4], 1 }

</bundles_post_ra>
